<compile_context>
chip_gen: v5e
topology: v5e:2x2
jax: 0.10.0
libtpu: 0.0.40
codegen_flags: <defaults>
</compile_context>

<pallas_src>
import jax
import jax.numpy as jnp
from jax.experimental import pallas as pl
from jax.experimental.pallas import tpu as pltpu  # noqa: F401  (TPU backend)

N_LAYERS = 4
FEAT = 10
FLAT = N_LAYERS * FEAT  # 40


def _linear4_kernel(zb_ref, w_ref, o_ref):
    # zb_ref: (2, 40)  -- row 0 = flattened z, row 1 = flattened bias
    # w_ref : (40, 40) -- block-diagonal weights, W_bd[l*10+i, l*10+o] = W[l,o,i]
    # o_ref : (1, 40)  -- flattened, lane-dense output row
    zb = zb_ref[...]                 # (2, 40)
    z = zb[0:1, :]                   # (1, 40)
    b = zb[1:2, :]                   # (1, 40)
    # One MXU pass: y[0, l*10+o] = sum_i z[0, l*10+i] * W_bd[l*10+i, l*10+o]
    y = jnp.dot(z, w_ref[...], preferred_element_type=jnp.float32) + b
    # Single lane-dense full-block store of the already-flattened result.
    o_ref[...] = y


def _pack_inputs(z, w, b):
    """Host-side packing: block-diagonal weights + fused (z, b) operand."""
    # wt[l, i, o] = w[l, o, i]
    wt = jnp.transpose(w, (0, 2, 1))                        # (4, 10, 10)
    eye = jnp.eye(N_LAYERS, dtype=w.dtype)                  # (4, 4)
    # W_bd[l*10+i, m*10+o] = eye[l, m] * wt[l, i, o]
    w_bd = jnp.einsum("lm,lio->limo", eye, wt).reshape(FLAT, FLAT)
    zb = jnp.stack([z.reshape(FLAT), b.reshape(FLAT)], axis=0)  # (2, 40)
    return zb, w_bd


def _run_linear4(zb, w_bd):
    # Two tiny operands, one (1, 40) output; whole arrays as default
    # whole-array blocks -> exactly 2 input DMAs + 1 output DMA, no grid.
    return pl.pallas_call(
        _linear4_kernel,
        out_shape=jax.ShapeDtypeStruct((1, FLAT), jnp.float32),
    )(zb, w_bd)


def init_params(key):
    """Deterministic synthetic parameters for fc0..fc3 (each Linear(10, 10))."""
    kw, kb = jax.random.split(key)
    bound = 1.0 / jnp.sqrt(jnp.float32(FEAT))
    w = jax.random.uniform(kw, (N_LAYERS, FEAT, FEAT), jnp.float32, -bound, bound)
    b = jax.random.uniform(kb, (N_LAYERS, FEAT), jnp.float32, -bound, bound)
    return w, b


def model_forward(x, w, b, z):
    """Mirrors Model.forward: `x` is accepted but unused (as in the PyTorch code)."""
    del x  # the PyTorch forward never touches its input
    zb, w_bd = _pack_inputs(z, w, b)
    y = _run_linear4(zb, w_bd)       # (1, 40), already in final flattened layout
    # (1, 40) -> (40,) is a metadata-only reshape (free for XLA).
    return y.reshape(FLAT)


if __name__ == "__main__":
    key = jax.random.PRNGKey(0)
    k_param, k_z, k_x = jax.random.split(key, 3)

    w, b = init_params(k_param)
    # the four `torch.randn(10)` draws, made deterministic
    z = jax.random.normal(k_z, (N_LAYERS, FEAT), jnp.float32)
    # example input consistent with Linear(10, 10) layers (unused by forward)
    x = jax.random.normal(k_x, (2, FEAT), jnp.float32)

    fwd = jax.jit(model_forward)
    out = fwd(x, w, b, z)
    out = jax.block_until_ready(out)

    # sanity check against a plain-JAX reference
    ref = (jnp.einsum("li,loi->lo", z, w) + b).reshape(-1)
    assert out.shape == (FLAT,)
    assert jnp.allclose(out, ref, atol=1e-5, rtol=1e-5)

    print("KERNEL_OK")
</pallas_src>

<mosaic_0001>
module attributes {stable_mosaic.version = 11 : i64} {
  func.func @_linear4_kernel(%arg0: memref<2x40xf32, #tpu.memory_space<vmem>>, %arg1: memref<40x40xf32, #tpu.memory_space<vmem>>, %arg2: memref<1x40xf32, #tpu.memory_space<vmem>>) attributes {dimension_semantics = [], scalar_prefetch = 0 : i64, scratch_operands = 0 : i64, tpu.core_type = #tpu.core_type<tc>} {
    %c0 = arith.constant 0 : index
    %c0_0 = arith.constant 0 : index
    %0 = vector.load %arg0[%c0, %c0_0] : memref<2x40xf32, #tpu.memory_space<vmem>>, vector<2x40xf32>
    %1 = vector.extract_strided_slice %0 {offsets = [0, 0], sizes = [1, 40], strides = [1, 1]} : vector<2x40xf32> to vector<1x40xf32>
    %2 = vector.extract_strided_slice %0 {offsets = [1, 0], sizes = [1, 40], strides = [1, 1]} : vector<2x40xf32> to vector<1x40xf32>
    %c0_1 = arith.constant 0 : index
    %c0_2 = arith.constant 0 : index
    %3 = vector.load %arg1[%c0_1, %c0_2] : memref<40x40xf32, #tpu.memory_space<vmem>>, vector<40x40xf32>
    %cst = arith.constant dense<0.000000e+00> : vector<1x40xf32>
    %4 = tpu.matmul %1, %3, %cst {dimension_numbers = #tpu.dot_dimension_numbers<[1], [0], [0], [1], [0, 0, 1, 1], [], []>} : vector<1x40xf32>, vector<40x40xf32>, vector<1x40xf32> -> vector<1x40xf32>
    %5 = arith.addf %4, %2 : vector<1x40xf32>
    %c0_3 = arith.constant 0 : index
    %c0_4 = arith.constant 0 : index
    %6 = vector.load %arg2[%c0_3, %c0_4] : memref<1x40xf32, #tpu.memory_space<vmem>>, vector<1x40xf32>
    tpu.vector_store %arg2[%c0_3, %c0_4], %5 {strides = array<i32>} : memref<1x40xf32, #tpu.memory_space<vmem>>, vector<1x40xf32>,
    return
  }
}

</mosaic_0001>

<bundles_post_ra>
// kernel: model_forward.1
= control target key start
LH: loop header
LB: loop body
LE: loop exit
PB: predicated region body
PF: predicated region fallthrough
CT: control target
= control target key end

     0   :  { %s127_s0 = inlined_call_operand.vmem [shape: f32[2,40], index: 0, kind: input, shape index: {}]   ;;  %s128_s1 = inlined_call_operand.vmem [shape: f32[40,40], index: 1, kind: input, shape index: {}]   ;;  %s129_s2 = inlined_call_operand.hbm [shape: f32[1,40], index: 2, kind: output, shape index: {}]  }
   0x1   :  { %v17_v0 = vld [vmem:[%s128_s1 + $0x20] sm:$0xff]  ;;  %v16_v1 = vld [vmem:[%s128_s1 + $0x18] sm:$0xff]  ;;  %v15_v2 = vld [vmem:[%s128_s1 + $0x10] sm:$0xff] }
   0x2   :  { %35 = vmatpush.msra.mxu0 %v17_v0 }
   0x3   :  { %7 = vsyncpa [#allocation3], 0  ;;  %v14_v3 = vld [vmem:[%s128_s1 + $0x8] sm:$0xff]  ;;  %v13_v4 = vld [vmem:[%s128_s1] sm:$0xff]  ;;  %vm21_vm0 = vcmask 326656   ;;  %s90_s21 = smov [#allocation2]  }
   0x4   :  { %36 = vmatpush.msra.mxu0 %v16_v1  ;;  %v12_v5 = vld [vmem:[%s127_s0] sm:$0x3]  ;;  %s51_s22 = sshll.u32 %s90_s21, 4  ;;  %s53_s25 = sshll.u32 %s129_s2, 4  ;;  %vm44_vm1 = vcmask 319488   ;;  %s52_s22 = int_to_ptr.vmem [resolvable:$true] %s51_s22  ;;  %s54_s25 = int_to_ptr.hbm [resolvable:$true] %s53_s25 }
   0x5   :  { %v19_v6 = vrot.slane %v12_v5, 1 }
   0x6   :  { %37 = vmatpush.msra.mxu0 %v15_v2 }
   0x8   :  { %38 = vmatpush.msra.mxu0 %v14_v3 }
   0xa   :  { %39 = vmatpush.msra.mxu0 %v13_v4 }
   0xb   :  { %62 = vmatmul.msk.f32.vlgmr.msra.gmra.mxu0 %vm21_vm0, %v12_v5 }
  0x88   :  { %v41_v7 = vpop.f32.mrf.mxu0 }
  0x89   :  { %v42_v8 = vadd.f32 %v41_v7, %v19_v6 }
  0x8b   :  { %45 = vst.msk [vmem:[#allocation2] sm:$0x1] %vm44_vm1, %v42_v8 }
  0x8c   :  { %56 = dma.vmem_to_hbm [thread:$0]  %s52_s22, 16, %s54_s25, [#allocation3]  }
  0x8d   :  { %88 = dma.done.wait [#allocation3], 16  }
  0x8e   :  { %89 = vsyncadd [#allocation3], 4294967280 }
  0x8f   :  { %61 = vsyncpa [#allocation3], 1 }

</bundles_post_ra>
